<compile_context>
chip_gen: v6e
topology: v6e:2x2x1
jax: 0.10.0
libtpu: 0.0.40
codegen_flags: <defaults>
</compile_context>

<pallas_src>
import functools

import jax
import jax.numpy as jnp
import numpy as np
from jax.experimental import pallas as pl
from jax.experimental.pallas import tpu as pltpu


def _sign(v):
    # torch.sign semantics (sign(0) == 0), written with selects for Mosaic.
    return jnp.where(v > 0, 1.0, jnp.where(v < 0, -1.0, 0.0)).astype(v.dtype)


# ------------------ Kernel 1: one-shot weight binarization ------------------
def binarize_kernel(w_ref, wb_ref):
    # w_ref: (9, Cout, Cin) -- taps (dy*3+dx) on the leading axis, out-channels
    # on sublanes, in-channels on lanes.
    w = w_ref[...]
    a = jnp.abs(w)
    # per-out-channel mean over (tap, Cin); sequential single-axis means keep
    # the lowering simple (equal-sized groups -> identical to one big mean).
    scale = jnp.mean(jnp.mean(a, axis=2, keepdims=True), axis=0, keepdims=True)
    wb_ref[...] = (scale * _sign(w)).astype(wb_ref.dtype)


# ------------------ Kernel 2: binary 3x3 conv (per batch image) -------------
def conv_kernel(x_ref, wb_ref, b_ref, o_ref, *, H, W):
    # x_ref : (1, Cin, Lin)        zero-padded image, flattened (H+2, W+2) row-major
    # wb_ref: (9, Cout, Cin)       binarized weights (resident across grid steps)
    # b_ref : (Cout, 1)            conv bias
    # o_ref : (1, Cout, H*(W+2))   output over (H, W+2); last 2 cols cropped later
    Wp = W + 2
    span = H * Wp

    acc = None
    for k in range(9):                       # static 3x3 tap loop (unrolled)
        dy, dx = k // 3, k % 3
        s = dy * Wp + dx                     # constant flat shift for this tap
        tap = x_ref[0, :, s:s + span]        # (Cin, span) lane-dense slice
        part = jnp.dot(wb_ref[k], tap, preferred_element_type=jnp.float32)
        acc = part if acc is None else acc + part          # (Cout, span)

    o_ref[0] = (acc + b_ref[...]).astype(o_ref.dtype)


# --------------------------------- wrapper ----------------------------------
def hard_binary_conv(x, weight, bias):
    """y = conv2d(x, mean(|W|)*sign(W), bias, stride=1, padding=1), NCHW."""
    N, Cin, H, W = x.shape
    Cout = weight.shape[0]
    Hp, Wp = H + 2, W + 2
    span = H * Wp
    Lin = Hp * Wp + 2       # +2 so the (dy=2, dx=2) tap slice stays in bounds

    # Weight taps laid out as (9, Cout, Cin); binarized once in Pallas.
    w_taps = weight.transpose(2, 3, 0, 1).reshape(9, Cout, Cin)
    wb = pl.pallas_call(
        binarize_kernel,
        out_shape=jax.ShapeDtypeStruct((9, Cout, Cin), jnp.float32),
        in_specs=[pl.BlockSpec(memory_space=pltpu.MemorySpace.VMEM)],
        out_specs=pl.BlockSpec(memory_space=pltpu.MemorySpace.VMEM),
    )(w_taps)

    # Halo'd (zero-padded) image with the flattened spatial axis on lanes.
    xpad = jnp.pad(x, ((0, 0), (0, 0), (1, 1), (1, 1)))
    xflat = jnp.pad(xpad.reshape(N, Cin, Hp * Wp),
                    ((0, 0), (0, 0), (0, Lin - Hp * Wp)))
    bias2d = bias.reshape(Cout, 1)

    out = pl.pallas_call(
        functools.partial(conv_kernel, H=H, W=W),
        out_shape=jax.ShapeDtypeStruct((N, Cout, span), jnp.float32),
        grid=(N,),
        in_specs=[
            pl.BlockSpec((1, Cin, Lin), lambda n: (n, 0, 0)),
            pl.BlockSpec((9, Cout, Cin), lambda n: (0, 0, 0)),
            pl.BlockSpec((Cout, 1), lambda n: (0, 0)),
        ],
        out_specs=pl.BlockSpec((1, Cout, span), lambda n: (n, 0, 0)),
        compiler_params=pltpu.CompilerParams(
            dimension_semantics=("parallel",)),
    )(xflat, wb, bias2d)

    # (N, Cout, H*(W+2)) -> (N, Cout, H, W): drop the 2 junk halo columns.
    return out.reshape(N, Cout, H, Wp)[:, :, :, :W]


# ------------------------- pure-JAX reference (NCHW) ------------------------
def reference_forward(x, weight, bias):
    Cout = weight.shape[0]
    scale = jnp.mean(jnp.abs(weight), axis=(1, 2, 3), keepdims=True)
    wb = scale * jnp.sign(weight)
    y = jax.lax.conv_general_dilated(
        x, wb, window_strides=(1, 1), padding=((1, 1), (1, 1)),
        dimension_numbers=("NCHW", "OIHW", "NCHW"),
        precision=jax.lax.Precision.HIGHEST)
    return y + bias.reshape(1, Cout, 1, 1)


if __name__ == "__main__":
    in_chn, out_chn = 4, 8
    N, H, W = 2, 16, 16

    key = jax.random.PRNGKey(0)
    kx, kw, kb = jax.random.split(key, 3)
    x = jax.random.normal(kx, (N, in_chn, H, W), jnp.float32)
    weight = jax.random.uniform(kw, (out_chn, in_chn, 3, 3), jnp.float32) * 0.001
    bias = jax.random.normal(kb, (out_chn,), jnp.float32) * 0.1

    fwd = jax.jit(hard_binary_conv)
    out = jax.block_until_ready(fwd(x, weight, bias))

    ref = reference_forward(x, weight, bias)
    np.testing.assert_allclose(np.asarray(out), np.asarray(ref), rtol=1e-4, atol=1e-4)
    print("KERNEL_OK")
</pallas_src>

<mosaic_0001>
module attributes {stable_mosaic.version = 11 : i64} {
  func.func @binarize_kernel(%arg0: memref<9x8x4xf32, #tpu.memory_space<vmem>>, %arg1: memref<9x8x4xf32, #tpu.memory_space<vmem>>) attributes {dimension_semantics = [], scalar_prefetch = 0 : i64, scratch_operands = 0 : i64, tpu.core_type = #tpu.core_type<tc>} {
    %c0 = arith.constant 0 : index
    %c0_0 = arith.constant 0 : index
    %c0_1 = arith.constant 0 : index
    %0 = vector.load %arg0[%c0, %c0_0, %c0_1] : memref<9x8x4xf32, #tpu.memory_space<vmem>>, vector<9x8x4xf32>
    %1 = math.absf %0 : vector<9x8x4xf32>
    %cst = arith.constant dense<0.000000e+00> : vector<9x8xf32>
    %2 = vector.multi_reduction <add>, %1, %cst [2] : vector<9x8x4xf32> to vector<9x8xf32>
    %3 = vector.shape_cast %2 : vector<9x8xf32> to vector<9x8x1xf32>
    %cst_2 = arith.constant 4.000000e+00 : f32
    %4 = vector.broadcast %cst_2 : f32 to vector<9x8x1xf32>
    %5 = arith.divf %3, %4 : vector<9x8x1xf32>
    %cst_3 = arith.constant dense<0.000000e+00> : vector<8x1xf32>
    %6 = vector.multi_reduction <add>, %5, %cst_3 [0] : vector<9x8x1xf32> to vector<8x1xf32>
    %7 = vector.shape_cast %6 : vector<8x1xf32> to vector<1x8x1xf32>
    %cst_4 = arith.constant 9.000000e+00 : f32
    %8 = vector.broadcast %cst_4 : f32 to vector<1x8x1xf32>
    %9 = arith.divf %7, %8 : vector<1x8x1xf32>
    %cst_5 = arith.constant 0.000000e+00 : f32
    %10 = vector.broadcast %cst_5 : f32 to vector<9x8x4xf32>
    %11 = arith.cmpf ogt, %0, %10 : vector<9x8x4xf32>
    %cst_6 = arith.constant 0.000000e+00 : f32
    %12 = vector.broadcast %cst_6 : f32 to vector<9x8x4xf32>
    %13 = arith.cmpf olt, %0, %12 : vector<9x8x4xf32>
    %cst_7 = arith.constant -1.000000e+00 : f32
    %cst_8 = arith.constant 0.000000e+00 : f32
    %14 = vector.broadcast %cst_7 : f32 to vector<9x8x4xf32>
    %15 = vector.broadcast %cst_8 : f32 to vector<9x8x4xf32>
    %16 = arith.select %13, %14, %15 : vector<9x8x4xi1>, vector<9x8x4xf32>
    %cst_9 = arith.constant 1.000000e+00 : f32
    %17 = vector.broadcast %cst_9 : f32 to vector<9x8x4xf32>
    %18 = arith.select %11, %17, %16 : vector<9x8x4xi1>, vector<9x8x4xf32>
    %19 = vector.broadcast %9 : vector<1x8x1xf32> to vector<9x8x4xf32>
    %20 = arith.mulf %19, %18 : vector<9x8x4xf32>
    %c0_10 = arith.constant 0 : index
    %c0_11 = arith.constant 0 : index
    %c0_12 = arith.constant 0 : index
    %21 = vector.load %arg1[%c0_10, %c0_11, %c0_12] : memref<9x8x4xf32, #tpu.memory_space<vmem>>, vector<9x8x4xf32>
    tpu.vector_store %arg1[%c0_10, %c0_11, %c0_12], %20 {strides = array<i32>} : memref<9x8x4xf32, #tpu.memory_space<vmem>>, vector<9x8x4xf32>,
    return
  }
}

module attributes {stable_mosaic.version = 11 : i64} {
  func.func @conv_kernel(%arg0: i32, %arg1: memref<1x4x326xf32, #tpu.memory_space<vmem>>, %arg2: memref<9x8x4xf32, #tpu.memory_space<vmem>>, %arg3: memref<8x1xf32, #tpu.memory_space<vmem>>, %arg4: memref<1x8x288xf32, #tpu.memory_space<vmem>>) attributes {dimension_semantics = [#tpu.dimension_semantics<parallel>], iteration_bounds = array<i64: 2>, scalar_prefetch = 0 : i64, scratch_operands = 0 : i64, tpu.core_type = #tpu.core_type<tc>, window_params = [{transform_indices = @transform_0, window_bounds = array<i64: 1, 4, 326>}, {pipeline_mode = #tpu.pipeline_mode<synchronous>, transform_indices = @transform_1, window_bounds = array<i64: 9, 8, 4>}, {pipeline_mode = #tpu.pipeline_mode<synchronous>, transform_indices = @transform_2, window_bounds = array<i64: 8, 1>}, {transform_indices = @transform_3, window_bounds = array<i64: 1, 8, 288>}]} {
    %c0 = arith.constant 0 : index
    %c0_0 = arith.constant 0 : index
    %c0_1 = arith.constant 0 : index
    %0 = vector.load %arg1[%c0, %c0_0, %c0_1] : memref<1x4x326xf32, #tpu.memory_space<vmem>>, vector<1x4x288xf32>
    %1 = vector.shape_cast %0 : vector<1x4x288xf32> to vector<4x288xf32>
    %c0_2 = arith.constant 0 : index
    %c0_3 = arith.constant 0 : index
    %c0_4 = arith.constant 0 : index
    %2 = vector.load %arg2[%c0_2, %c0_3, %c0_4] : memref<9x8x4xf32, #tpu.memory_space<vmem>>, vector<1x8x4xf32>
    %3 = vector.shape_cast %2 : vector<1x8x4xf32> to vector<8x4xf32>
    %cst = arith.constant dense<0.000000e+00> : vector<8x288xf32>
    %4 = tpu.matmul %3, %1, %cst {dimension_numbers = #tpu.dot_dimension_numbers<[1], [0], [0], [1], [0, 0, 1, 1], [], []>} : vector<8x4xf32>, vector<4x288xf32>, vector<8x288xf32> -> vector<8x288xf32>
    %c0_5 = arith.constant 0 : index
    %c0_6 = arith.constant 0 : index
    %c1 = arith.constant 1 : index
    %5 = vector.load %arg1[%c0_5, %c0_6, %c1] : memref<1x4x326xf32, #tpu.memory_space<vmem>>, vector<1x4x288xf32>
    %6 = vector.shape_cast %5 : vector<1x4x288xf32> to vector<4x288xf32>
    %c1_7 = arith.constant 1 : index
    %c0_8 = arith.constant 0 : index
    %c0_9 = arith.constant 0 : index
    %7 = vector.load %arg2[%c1_7, %c0_8, %c0_9] : memref<9x8x4xf32, #tpu.memory_space<vmem>>, vector<1x8x4xf32>
    %8 = vector.shape_cast %7 : vector<1x8x4xf32> to vector<8x4xf32>
    %cst_10 = arith.constant dense<0.000000e+00> : vector<8x288xf32>
    %9 = tpu.matmul %8, %6, %cst_10 {dimension_numbers = #tpu.dot_dimension_numbers<[1], [0], [0], [1], [0, 0, 1, 1], [], []>} : vector<8x4xf32>, vector<4x288xf32>, vector<8x288xf32> -> vector<8x288xf32>
    %10 = arith.addf %4, %9 : vector<8x288xf32>
    %c0_11 = arith.constant 0 : index
    %c0_12 = arith.constant 0 : index
    %c2 = arith.constant 2 : index
    %11 = vector.load %arg1[%c0_11, %c0_12, %c2] : memref<1x4x326xf32, #tpu.memory_space<vmem>>, vector<1x4x288xf32>
    %12 = vector.shape_cast %11 : vector<1x4x288xf32> to vector<4x288xf32>
    %c2_13 = arith.constant 2 : index
    %c0_14 = arith.constant 0 : index
    %c0_15 = arith.constant 0 : index
    %13 = vector.load %arg2[%c2_13, %c0_14, %c0_15] : memref<9x8x4xf32, #tpu.memory_space<vmem>>, vector<1x8x4xf32>
    %14 = vector.shape_cast %13 : vector<1x8x4xf32> to vector<8x4xf32>
    %cst_16 = arith.constant dense<0.000000e+00> : vector<8x288xf32>
    %15 = tpu.matmul %14, %12, %cst_16 {dimension_numbers = #tpu.dot_dimension_numbers<[1], [0], [0], [1], [0, 0, 1, 1], [], []>} : vector<8x4xf32>, vector<4x288xf32>, vector<8x288xf32> -> vector<8x288xf32>
    %16 = arith.addf %10, %15 : vector<8x288xf32>
    %c0_17 = arith.constant 0 : index
    %c0_18 = arith.constant 0 : index
    %c18 = arith.constant 18 : index
    %17 = vector.load %arg1[%c0_17, %c0_18, %c18] : memref<1x4x326xf32, #tpu.memory_space<vmem>>, vector<1x4x288xf32>
    %18 = vector.shape_cast %17 : vector<1x4x288xf32> to vector<4x288xf32>
    %c3 = arith.constant 3 : index
    %c0_19 = arith.constant 0 : index
    %c0_20 = arith.constant 0 : index
    %19 = vector.load %arg2[%c3, %c0_19, %c0_20] : memref<9x8x4xf32, #tpu.memory_space<vmem>>, vector<1x8x4xf32>
    %20 = vector.shape_cast %19 : vector<1x8x4xf32> to vector<8x4xf32>
    %cst_21 = arith.constant dense<0.000000e+00> : vector<8x288xf32>
    %21 = tpu.matmul %20, %18, %cst_21 {dimension_numbers = #tpu.dot_dimension_numbers<[1], [0], [0], [1], [0, 0, 1, 1], [], []>} : vector<8x4xf32>, vector<4x288xf32>, vector<8x288xf32> -> vector<8x288xf32>
    %22 = arith.addf %16, %21 : vector<8x288xf32>
    %c0_22 = arith.constant 0 : index
    %c0_23 = arith.constant 0 : index
    %c19 = arith.constant 19 : index
    %23 = vector.load %arg1[%c0_22, %c0_23, %c19] : memref<1x4x326xf32, #tpu.memory_space<vmem>>, vector<1x4x288xf32>
    %24 = vector.shape_cast %23 : vector<1x4x288xf32> to vector<4x288xf32>
    %c4 = arith.constant 4 : index
    %c0_24 = arith.constant 0 : index
    %c0_25 = arith.constant 0 : index
    %25 = vector.load %arg2[%c4, %c0_24, %c0_25] : memref<9x8x4xf32, #tpu.memory_space<vmem>>, vector<1x8x4xf32>
    %26 = vector.shape_cast %25 : vector<1x8x4xf32> to vector<8x4xf32>
    %cst_26 = arith.constant dense<0.000000e+00> : vector<8x288xf32>
    %27 = tpu.matmul %26, %24, %cst_26 {dimension_numbers = #tpu.dot_dimension_numbers<[1], [0], [0], [1], [0, 0, 1, 1], [], []>} : vector<8x4xf32>, vector<4x288xf32>, vector<8x288xf32> -> vector<8x288xf32>
    %28 = arith.addf %22, %27 : vector<8x288xf32>
    %c0_27 = arith.constant 0 : index
    %c0_28 = arith.constant 0 : index
    %c20 = arith.constant 20 : index
    %29 = vector.load %arg1[%c0_27, %c0_28, %c20] : memref<1x4x326xf32, #tpu.memory_space<vmem>>, vector<1x4x288xf32>
    %30 = vector.shape_cast %29 : vector<1x4x288xf32> to vector<4x288xf32>
    %c5 = arith.constant 5 : index
    %c0_29 = arith.constant 0 : index
    %c0_30 = arith.constant 0 : index
    %31 = vector.load %arg2[%c5, %c0_29, %c0_30] : memref<9x8x4xf32, #tpu.memory_space<vmem>>, vector<1x8x4xf32>
    %32 = vector.shape_cast %31 : vector<1x8x4xf32> to vector<8x4xf32>
    %cst_31 = arith.constant dense<0.000000e+00> : vector<8x288xf32>
    %33 = tpu.matmul %32, %30, %cst_31 {dimension_numbers = #tpu.dot_dimension_numbers<[1], [0], [0], [1], [0, 0, 1, 1], [], []>} : vector<8x4xf32>, vector<4x288xf32>, vector<8x288xf32> -> vector<8x288xf32>
    %34 = arith.addf %28, %33 : vector<8x288xf32>
    %c0_32 = arith.constant 0 : index
    %c0_33 = arith.constant 0 : index
    %c36 = arith.constant 36 : index
    %35 = vector.load %arg1[%c0_32, %c0_33, %c36] : memref<1x4x326xf32, #tpu.memory_space<vmem>>, vector<1x4x288xf32>
    %36 = vector.shape_cast %35 : vector<1x4x288xf32> to vector<4x288xf32>
    %c6 = arith.constant 6 : index
    %c0_34 = arith.constant 0 : index
    %c0_35 = arith.constant 0 : index
    %37 = vector.load %arg2[%c6, %c0_34, %c0_35] : memref<9x8x4xf32, #tpu.memory_space<vmem>>, vector<1x8x4xf32>
    %38 = vector.shape_cast %37 : vector<1x8x4xf32> to vector<8x4xf32>
    %cst_36 = arith.constant dense<0.000000e+00> : vector<8x288xf32>
    %39 = tpu.matmul %38, %36, %cst_36 {dimension_numbers = #tpu.dot_dimension_numbers<[1], [0], [0], [1], [0, 0, 1, 1], [], []>} : vector<8x4xf32>, vector<4x288xf32>, vector<8x288xf32> -> vector<8x288xf32>
    %40 = arith.addf %34, %39 : vector<8x288xf32>
    %c0_37 = arith.constant 0 : index
    %c0_38 = arith.constant 0 : index
    %c37 = arith.constant 37 : index
    %41 = vector.load %arg1[%c0_37, %c0_38, %c37] : memref<1x4x326xf32, #tpu.memory_space<vmem>>, vector<1x4x288xf32>
    %42 = vector.shape_cast %41 : vector<1x4x288xf32> to vector<4x288xf32>
    %c7 = arith.constant 7 : index
    %c0_39 = arith.constant 0 : index
    %c0_40 = arith.constant 0 : index
    %43 = vector.load %arg2[%c7, %c0_39, %c0_40] : memref<9x8x4xf32, #tpu.memory_space<vmem>>, vector<1x8x4xf32>
    %44 = vector.shape_cast %43 : vector<1x8x4xf32> to vector<8x4xf32>
    %cst_41 = arith.constant dense<0.000000e+00> : vector<8x288xf32>
    %45 = tpu.matmul %44, %42, %cst_41 {dimension_numbers = #tpu.dot_dimension_numbers<[1], [0], [0], [1], [0, 0, 1, 1], [], []>} : vector<8x4xf32>, vector<4x288xf32>, vector<8x288xf32> -> vector<8x288xf32>
    %46 = arith.addf %40, %45 : vector<8x288xf32>
    %c0_42 = arith.constant 0 : index
    %c0_43 = arith.constant 0 : index
    %c38 = arith.constant 38 : index
    %47 = vector.load %arg1[%c0_42, %c0_43, %c38] : memref<1x4x326xf32, #tpu.memory_space<vmem>>, vector<1x4x288xf32>
    %48 = vector.shape_cast %47 : vector<1x4x288xf32> to vector<4x288xf32>
    %c8 = arith.constant 8 : index
    %c0_44 = arith.constant 0 : index
    %c0_45 = arith.constant 0 : index
    %49 = vector.load %arg2[%c8, %c0_44, %c0_45] : memref<9x8x4xf32, #tpu.memory_space<vmem>>, vector<1x8x4xf32>
    %50 = vector.shape_cast %49 : vector<1x8x4xf32> to vector<8x4xf32>
    %cst_46 = arith.constant dense<0.000000e+00> : vector<8x288xf32>
    %51 = tpu.matmul %50, %48, %cst_46 {dimension_numbers = #tpu.dot_dimension_numbers<[1], [0], [0], [1], [0, 0, 1, 1], [], []>} : vector<8x4xf32>, vector<4x288xf32>, vector<8x288xf32> -> vector<8x288xf32>
    %52 = arith.addf %46, %51 : vector<8x288xf32>
    %c0_47 = arith.constant 0 : index
    %c0_48 = arith.constant 0 : index
    %53 = vector.load %arg3[%c0_47, %c0_48] : memref<8x1xf32, #tpu.memory_space<vmem>>, vector<8x1xf32>
    %54 = vector.broadcast %53 : vector<8x1xf32> to vector<8x288xf32>
    %55 = arith.addf %52, %54 : vector<8x288xf32>
    %c0_49 = arith.constant 0 : index
    %c0_50 = arith.constant 0 : index
    %c0_51 = arith.constant 0 : index
    %56 = vector.load %arg4[%c0_49, %c0_50, %c0_51] : memref<1x8x288xf32, #tpu.memory_space<vmem>>, vector<1x8x288xf32>
    %57 = vector.shape_cast %56 : vector<1x8x288xf32> to vector<8x288xf32>
    %58 = vector.shape_cast %55 : vector<8x288xf32> to vector<1x8x288xf32>
    tpu.vector_store %arg4[%c0_49, %c0_50, %c0_51], %58 {strides = array<i32>} : memref<1x8x288xf32, #tpu.memory_space<vmem>>, vector<1x8x288xf32>,
    return
  }
  func.func @transform_0(%arg0: i32) -> (i32, i32, i32) {
    %c0_i32 = arith.constant 0 : i32
    %c0_i32_0 = arith.constant 0 : i32
    %c0_i32_1 = arith.constant 0 : i32
    return %arg0, %c0_i32, %c0_i32_0 : i32, i32, i32
  }
  func.func @transform_1(%arg0: i32) -> (i32, i32, i32) {
    %c0_i32 = arith.constant 0 : i32
    %c0_i32_0 = arith.constant 0 : i32
    %c0_i32_1 = arith.constant 0 : i32
    %c0_i32_2 = arith.constant 0 : i32
    return %c0_i32, %c0_i32_0, %c0_i32_1 : i32, i32, i32
  }
  func.func @transform_2(%arg0: i32) -> (i32, i32) {
    %c0_i32 = arith.constant 0 : i32
    %c0_i32_0 = arith.constant 0 : i32
    %c0_i32_1 = arith.constant 0 : i32
    return %c0_i32, %c0_i32_0 : i32, i32
  }
  func.func @transform_3(%arg0: i32) -> (i32, i32, i32) {
    %c0_i32 = arith.constant 0 : i32
    %c0_i32_0 = arith.constant 0 : i32
    %c0_i32_1 = arith.constant 0 : i32
    return %arg0, %c0_i32, %c0_i32_0 : i32, i32, i32
  }
}

</mosaic_0001>

<bundles_post_ra>
// kernel: hard_binary_conv.2
= control target key start
LH: loop header
LB: loop body
LE: loop exit
PB: predicated region body
PF: predicated region fallthrough
CT: control target
= control target key end

     0   :  { %vm26_vm0 = vcmask 31744   ;;  %v133_v46 = vmov 0.0   ;;  %s271_s0 = inlined_call_operand.vmem [shape: f32[9,8,4], index: 0, kind: input, shape index: {}]   ;;  %s272_s1 = inlined_call_operand.vmem [shape: f32[9,8,4], index: 1, kind: output, shape index: {}]  }
   0x1   :  { %v147_v0 = vld [vmem:[%s271_s0] sm:$0xff]  ;;  %v152_v1 = vld [vmem:[%s271_s0 + $0x10] sm:$0xff]  ;;  %v157_v2 = vld [vmem:[%s271_s0 + $0x8] sm:$0xff] }
   0x2   :  { %v17_v3 = vand.u32 2147483647, %v147_v0  ;;  %v19_v4 = vand.u32 2147483647, %v152_v1  ;;  %v18_v5 = vand.u32 2147483647, %v157_v2 }
   0x3   :  { %v165_v6 = vld [vmem:[%s271_s0 + $0x18] sm:$0xff]  ;;  %v172_v9 = vld [vmem:[%s271_s0 + $0x20] sm:$0xff]  ;;  %v177_v10 = vld [vmem:[%s271_s0 + $0x28] sm:$0xff]  ;;  %vm83_vm1 = vcmp.lt.f32.partialorder %v147_v0, 0.0  ;;  %vm85_vm2 = vcmp.lt.f32.partialorder %v152_v1, 0.0  ;;  %vm84_vm3 = vcmp.lt.f32.partialorder %v157_v2, 0.0 }
   0x4   :  { %v27_v7 = vsel %vm26_vm0, %v17_v3, 0.0  ;;  %v33_v8 = vsel %vm26_vm0, %v19_v4, 0.0  ;;  %v30_v11 = vsel %vm26_vm0, %v18_v5, 0.0  ;;  %v20_v12 = vand.u32 2147483647, %v165_v6  ;;  %v185_v14 = vld [vmem:[%s271_s0 + $0x30] sm:$0xff] }
   0x5   :  { %28 = vadd.xlane.f32.xlu0 %v27_v7  ;;  %34 = vadd.xlane.f32.xlu1 %v33_v8  ;;  %v21_v13 = vand.u32 2147483647, %v172_v9  ;;  %v22_v16 = vand.u32 2147483647, %v177_v10  ;;  %v192_v17 = vld [vmem:[%s271_s0 + $0x38] sm:$0xff]  ;;  %v201_v22 = vld [vmem:[%s271_s0 + $0x40] sm:$0xff] }
   0x6   :  { %v36_v15 = vsel %vm26_vm0, %v20_v12, 0.0  ;;  %v23_v20 = vand.u32 2147483647, %v185_v14  ;;  %v24_v21 = vand.u32 2147483647, %v192_v17  ;;  %vm74_vm4 = vcmp.gt.f32.partialorder %v147_v0, 0.0 }
   0x7   :  { %v39_v18 = vsel %vm26_vm0, %v21_v13, 0.0  ;;  %v42_v19 = vsel %vm26_vm0, %v22_v16, 0.0  ;;  %v25_v25 = vand.u32 2147483647, %v201_v22  ;;  %v92_v47 = vsel %vm83_vm1, -1.0, %v133_v46 }
   0x8   :  { %v45_v23 = vsel %vm26_vm0, %v23_v20, 0.0  ;;  %v48_v24 = vsel %vm26_vm0, %v24_v21, 0.0  ;;  %vm76_vm5 = vcmp.gt.f32.partialorder %v152_v1, 0.0  ;;  %v94_v48 = vsel %vm85_vm2, -1.0, %v133_v46 }
   0x9   :  { %31 = vadd.xlane.f32.xlu0 %v30_v11  ;;  %37 = vadd.xlane.f32.xlu1 %v36_v15  ;;  %v51_v26 = vsel %vm26_vm0, %v25_v25, 0.0  ;;  %vm86_vm6 = vcmp.lt.f32.partialorder %v165_v6, 0.0  ;;  %vm75_vm7 = vcmp.gt.f32.partialorder %v157_v2, 0.0  ;;  %v93_v51 = vsel %vm84_vm3, -1.0, %v133_v46 }
   0xa   :  { %vm87_vm8 = vcmp.lt.f32.partialorder %v172_v9, 0.0  ;;  %vm88_vm9 = vcmp.lt.f32.partialorder %v177_v10, 0.0  ;;  %vm89_vm10 = vcmp.lt.f32.partialorder %v185_v14, 0.0  ;;  %vm90_vm11 = vcmp.lt.f32.partialorder %v192_v17, 0.0 }
   0xb   :  { %vm77_vm12 = vcmp.gt.f32.partialorder %v165_v6, 0.0  ;;  %v95_v55 = vsel %vm86_vm6, -1.0, %v133_v46  ;;  %vm78_vm13 = vcmp.gt.f32.partialorder %v172_v9, 0.0  ;;  %vm91_vm14 = vcmp.lt.f32.partialorder %v201_v22, 0.0 }
   0xc   :  { %v96_v56 = vsel %vm87_vm8, -1.0, %v133_v46  ;;  %vm79_vm15 = vcmp.gt.f32.partialorder %v177_v10, 0.0  ;;  %v97_v57 = vsel %vm88_vm9, -1.0, %v133_v46  ;;  %vm80_vm1 = vcmp.gt.f32.partialorder %v185_v14, 0.0 }
   0xd   :  { %40 = vadd.xlane.f32.xlu0 %v39_v18  ;;  %43 = vadd.xlane.f32.xlu1 %v42_v19  ;;  %v98_v59 = vsel %vm89_vm10, -1.0, %v133_v46  ;;  %vm81_vm2 = vcmp.gt.f32.partialorder %v192_v17, 0.0  ;;  %v99_v60 = vsel %vm90_vm11, -1.0, %v133_v46  ;;  %v101_v61 = vsel %vm74_vm4, 1.0, %v92_v47 }
   0xe   :  { %vm82_vm3 = vcmp.gt.f32.partialorder %v201_v22, 0.0  ;;  %v100_v62 = vsel %vm91_vm14, -1.0, %v133_v46  ;;  %v103_v3 = vsel %vm76_vm5, 1.0, %v94_v48  ;;  %v102_v4 = vsel %vm75_vm7, 1.0, %v93_v51 }
   0xf   :  { %v104_v5 = vsel %vm77_vm12, 1.0, %v95_v55  ;;  %v105_v7 = vsel %vm78_vm13, 1.0, %v96_v56  ;;  %v106_v8 = vsel %vm79_vm15, 1.0, %v97_v57  ;;  %v107_v10 = vsel %vm80_vm1, 1.0, %v98_v59 }
  0x10   :  { %v108_v0 = vsel %vm81_vm2, 1.0, %v99_v60  ;;  %v109_v12 = vsel %vm82_vm3, 1.0, %v100_v62 }
  0x11   :  { %46 = vadd.xlane.f32.xlu0 %v45_v23  ;;  %49 = vadd.xlane.f32.xlu1 %v48_v24 }
  0x15   :  { %52 = vadd.xlane.f32.xlu0 %v51_v26 }
  0x8e   :  { %v29_v27 = vpop.xlane.xlu0 %28  ;;  %v35_v28 = vpop.xlane.xlu1 %34 }
  0x8f   :  { %v55_v31 = vmul.f32 0.25, %v29_v27  ;;  %v57_v33 = vmul.f32 0.25, %v35_v28 }
  0x92   :  { %v32_v29 = vpop.xlane.xlu0 %31  ;;  %v38_v30 = vpop.xlane.xlu1 %37 }
  0x93   :  { %v56_v32 = vmul.f32 0.25, %v32_v29  ;;  %v58_v35 = vmul.f32 0.25, %v38_v30 }
  0x95   :  { %v64_v34 = vadd.f32 %v56_v32, %v55_v31 }
  0x96   :  { %v41_v36 = vpop.xlane.xlu0 %40  ;;  %v44_v37 = vpop.xlane.xlu1 %43 }
  0x97   :  { %v65_v38 = vadd.f32 %v64_v34, %v57_v33  ;;  %v59_v39 = vmul.f32 0.25, %v41_v36  ;;  %v60_v41 = vmul.f32 0.25, %v44_v37 }
  0x99   :  { %v66_v40 = vadd.f32 %v65_v38, %v58_v35 }
  0x9a   :  { %v47_v42 = vpop.xlane.xlu0 %46  ;;  %v50_v43 = vpop.xlane.xlu1 %49 }
  0x9b   :  { %v67_v44 = vadd.f32 %v66_v40, %v59_v39  ;;  %v61_v45 = vmul.f32 0.25, %v47_v42  ;;  %v62_v50 = vmul.f32 0.25, %v50_v43 }
  0x9d   :  { %v68_v49 = vadd.f32 %v67_v44, %v60_v41 }
  0x9e   :  { %v53_v52 = vpop.xlane.xlu0 %52 }
  0x9f   :  { %v69_v53 = vadd.f32 %v68_v49, %v61_v45  ;;  %v63_v54 = vmul.f32 0.25, %v53_v52 }
  0xa1   :  { %v70_v58 = vadd.f32 %v69_v53, %v62_v50 }
  0xa3   :  { %v71_v63 = vadd.f32 %v70_v58, %v63_v54 }
  0xa5   :  { %v73_v11 = vmul.f32 0.11111111, %v71_v63 }
  0xa7   :  { %v110_v13 = vmul.f32 %v101_v61, %v73_v11  ;;  %v111_v14 = vmul.f32 %v102_v4, %v73_v11  ;;  %v112_v15 = vmul.f32 %v103_v3, %v73_v11  ;;  %v113_v16 = vmul.f32 %v104_v5, %v73_v11 }
  0xa8   :  { %v114_v1 = vmul.f32 %v105_v7, %v73_v11  ;;  %v115_v17 = vmul.f32 %v106_v8, %v73_v11  ;;  %v116_v18 = vmul.f32 %v107_v10, %v73_v11  ;;  %v117_v2 = vmul.f32 %v108_v0, %v73_v11 }
  0xa9   :  { %v118_v19 = vmul.f32 %v109_v12, %v73_v11  ;;  %119 = vst.msk [vmem:[%s272_s1] sm:$0xff] %vm26_vm0, %v110_v13  ;;  %120 = vst.msk [vmem:[%s272_s1 + $0x8] sm:$0xff] %vm26_vm0, %v111_v14 }
  0xaa   :  { %121 = vst.msk [vmem:[%s272_s1 + $0x10] sm:$0xff] %vm26_vm0, %v112_v15  ;;  %122 = vst.msk [vmem:[%s272_s1 + $0x18] sm:$0xff] %vm26_vm0, %v113_v16 }
  0xab   :  { %123 = vst.msk [vmem:[%s272_s1 + $0x20] sm:$0xff] %vm26_vm0, %v114_v1  ;;  %124 = vst.msk [vmem:[%s272_s1 + $0x28] sm:$0xff] %vm26_vm0, %v115_v17 }
  0xac   :  { %125 = vst.msk [vmem:[%s272_s1 + $0x30] sm:$0xff] %vm26_vm0, %v116_v18  ;;  %126 = vst.msk [vmem:[%s272_s1 + $0x38] sm:$0xff] %vm26_vm0, %v117_v2 }
  0xad   :  { %127 = vst.msk [vmem:[%s272_s1 + $0x40] sm:$0xff] %vm26_vm0, %v118_v19 }

// kernel: hard_binary_conv.3
= control target key start
LH: loop header
LB: loop body
LE: loop exit
PB: predicated region body
PF: predicated region fallthrough
CT: control target
= control target key end

     0   :  { %s1928_s12 = smov 0   ;;  %s2101_s0 = inlined_call_operand.vmem [shape: f32[2,4,326], index: 0, kind: input, shape index: {}]   ;;  %s2102_s1 = inlined_call_operand.vmem [shape: f32[9,8,4], index: 1, kind: input, shape index: {}]   ;;  %s2103_s2 = inlined_call_operand.vmem [shape: f32[8,1], index: 2, kind: input, shape index: {}]   ;;  %s2104_s3 = inlined_call_operand.vmem [shape: f32[2,8,288], index: 3, kind: output, shape index: {}]  }
   0x1 LB: > { %s1741_s13 = sadd.s32 4294967295, %s1895_s12   ;;  %p1745_p0 = scmp.ge.s32.totalorder %s1895_s12, 1  ;;  %s1895_s12 = sphi %s1928_s12, %s13_s12  }
   0x2   : > { %p137_p1 = scmp.lt.s32.totalorder %s1895_s12, 3 }
   0x4   : > { %p138_p2 = pnand %p1745_p0, %p137_p1 }
   0x5   : > { %p161_p3 = scmp.lt.s32.totalorder (!%p138_p2), %s1741_s13, 1  ;;  %s1899_s18 = smov (!%p138_p2), 127  }
   0x6   : > { %141 = sbr.rel (%p138_p2) target bundleno = 378 (0x17a), region = 32  ;;  %s1900_s19 = smov (!%p138_p2), 126  }
   0x7   : > { %s1901_s20 = smov (!%p138_p2), 110   ;;  %s1902_s21 = smov (!%p138_p2), 109  }
   0x8   : > { %s1903_s22 = smov (!%p138_p2), 108   ;;  %s1904_s23 = smov (!%p138_p2), 92  }
   0x9   : > { %s1906_s24 = smov (!%p138_p2), 91   ;;  %s1907_s25 = smov (!%p138_p2), 90  }
   0xb   : > { %v1897_v0 = vmov 0.0   ;;  %vm1898_vm0 = vmmov 0   ;;  %s2106_s13 = smov (!%p161_p3, %s1741_s13), 1  ;;  %v1905_v10 = vmov 0   ;;  %v1673_v12 = vld [vmem:[%s2103_s2] sm:$0xff]  ;;  %vm192_vm1 = vcmask 1043456  }
   0xc   : > { %1821 = vmatprep.subr.mxu1 %v1897_v0  ;;  %1823 = vmatprep.mubr.msk.f32.mxu1 %vm1898_vm0, %v1897_v0  ;;  %s1866_s14 = smul.u32 12, %s2106_s13  ;;  %v1748_v13 = vld [vmem:[%s2102_s1 + $0x8] sm:$0xff]  ;;  %vm188_vm2 = vcmask 31744   ;;  %v173_v16 = vld [vmem:[%s2102_s1] sm:$0xff]  ;;  %vm185_vm3 = vcmask 1039360   ;;  %v1759_v19 = vld [vmem:[%s2102_s1 + $0x10] sm:$0xff] }
   0xd   : > { %263 = vmatprep.mubr.f32.mxu0 %v1897_v0  ;;  %1887 = vset.pattern.permute.xlu0 %v1905_v10  ;;  %vm503_vm4 = vcmask 1031168   ;;  %v1765_v26 = vld [vmem:[%s2102_s1 + $0x18] sm:$0xff]  ;;  %vm672_vm5 = vcmask 900096   ;;  %vm841_vm6 = vcmask 891904   ;;  %v1771_v35 = vld [vmem:[%s2102_s1 + $0x20] sm:$0xff]  ;;  %vm1010_vm7 = vcmask 883712  }
   0xe   : > { %s1946_s17 = scalar_lea.vmem %s2101_s0, %s1866_s14  ;;  %v1777_v40 = vld [vmem:[%s2102_s1 + $0x28] sm:$0xff]  ;;  %vm1179_vm8 = vcmask 752640   ;;  %v1783_v45 = vld [vmem:[%s2102_s1 + $0x30] sm:$0xff]  ;;  %vm1348_vm9 = vcmask 744448   ;;  %v1789_v50 = vld [vmem:[%s2102_s1 + $0x38] sm:$0xff]  ;;  %vm1517_vm10 = vcmask 736256  }
   0xf   : > { %v172_v1 = vld [vmem:[%s1946_s17 + $0x8] sm:$0xf]  ;;  %v1950_v2 = vld [vmem:[%s1946_s17] sm:$0xff]  ;;  %vm1684_vm11 = vcmask 261120  }
  0x10   : > { %183 = vrot.lane.b32.xlu0 %v172_v1, %s1899_s18  ;;  %179 = vrot.lane.b32.xlu1 %v1950_v2, %s1899_s18  ;;  %v491_v3 = vld [vmem:[%s1946_s17 + $0x8] sm:$0xf]  ;;  %v1956_v4 = vcombine.high %v1950_v2, %v1950_v2  ;;  %v1795_v57 = vld [vmem:[%s2102_s1 + $0x40] sm:$0xff] }
  0x11   : > { %v660_v5 = vld [vmem:[%s1946_s17 + $0x8] sm:$0xf] }
  0x12   : > { %v829_v6 = vld [vmem:[%s1946_s17 + $0x8] sm:$0xf] }
  0x13   : > { %v998_v7 = vld [vmem:[%s1946_s17 + $0x8] sm:$0xf] }
  0x14   : > { %501 = vrot.lane.b32.xlu0 %v491_v3, %s1900_s19  ;;  %497 = vrot.lane.b32.xlu1 %v1950_v2, %s1900_s19  ;;  %v1167_v8 = vld [vmem:[%s1946_s17 + $0x8] sm:$0xf] }
  0x15   : > { %v1336_v9 = vld [vmem:[%s1946_s17 + $0x8] sm:$0xf] }
  0x16   : > { %v1505_v11 = vld [vmem:[%s1946_s17 + $0x8] sm:$0xf] }
  0x18   : > { %499 = vrot.lane.b32.xlu1 %v1956_v4, %s1900_s19  ;;  %181 = vrot.lane.b32.xlu0 %v1956_v4, %s1899_s18 }
  0x1c   : > { %670 = vrot.lane.b32.xlu1 %v660_v5, %s1901_s20  ;;  %668 = vrot.lane.b32.xlu0 %v1956_v4, %s1901_s20 }
  0x20   : > { %837 = vrot.lane.b32.xlu1 %v1956_v4, %s1902_s21  ;;  %666 = vrot.lane.b32.xlu0 %v1950_v2, %s1901_s20 }
  0x24   : > { %835 = vrot.lane.b32.xlu1 %v1950_v2, %s1902_s21  ;;  %839 = vrot.lane.b32.xlu0 %v829_v6, %s1902_s21  ;;  %s1867_s21 = smul.u32 24, %s2106_s13 }
  0x28   : > { %1008 = vrot.lane.b32.xlu1 %v998_v7, %s1903_s22  ;;  %1006 = vrot.lane.b32.xlu0 %v1956_v4, %s1903_s22 }
  0x2c   : > { %1175 = vrot.lane.b32.xlu1 %v1956_v4, %s1904_s23  ;;  %1004 = vrot.lane.b32.xlu0 %v1950_v2, %s1903_s22 }
  0x30   : > { %1173 = vrot.lane.b32.xlu1 %v1950_v2, %s1904_s23  ;;  %1177 = vrot.lane.b32.xlu0 %v1167_v8, %s1904_s23 }
  0x34   : > { %1346 = vrot.lane.b32.xlu1 %v1336_v9, %s1906_s24  ;;  %1344 = vrot.lane.b32.xlu0 %v1956_v4, %s1906_s24 }
  0x38   : > { %1513 = vrot.lane.b32.xlu1 %v1956_v4, %s1907_s25  ;;  %1342 = vrot.lane.b32.xlu0 %v1950_v2, %s1906_s24  ;;  %s170_s24 = scalar_lea.vmem %s2104_s3, %s1867_s21 }
  0x3c   : > { %1511 = vrot.lane.b32.xlu1 %v1950_v2, %s1907_s25  ;;  %1515 = vrot.lane.b32.xlu0 %v1505_v11, %s1907_s25 }
  0x40   : > { %1676 = vperm.xlu0 %1887, %v1673_v12  }
  0x82   : > { %v184_v14 = vpop.permute.xlu0 %183  ;;  %v180_v15 = vpop.permute.xlu1 %179 }
  0x83   : > { %1822 = vmatpush3.msk.msra.mxu1 %vm192_vm1, %v184_v14 }
  0x84   : > { %1824 = vmatmul.mubr.msk.f32.vlgmr.msra.gmra.mxu1 %vm188_vm2, %v1748_v13  ;;  %1826 = vmatprep.subr.mxu1 %v1897_v0 }
  0x85   : > { %1827 = vmatpush3.msk.msra.mxu1 %vm192_vm1, %v172_v1  ;;  %1828 = vmatprep.mubr.msk.f32.mxu1 %vm1898_vm0, %v1897_v0 }
  0x86   : > { %v502_v17 = vpop.permute.xlu0 %501  ;;  %v498_v18 = vpop.permute.xlu1 %497  ;;  %1831 = vmatprep.subr.mxu1 %v1897_v0 }
  0x88   : > { %1829 = vmatmul.mubr.msk.f32.vlgmr.msra.gmra.mxu1 %vm188_vm2, %v173_v16 }
  0x89   : > { %1832 = vmatpush3.msk.msra.mxu1 %vm192_vm1, %v502_v17  ;;  %1833 = vmatprep.mubr.msk.f32.mxu1 %vm1898_vm0, %v1897_v0 }
  0x8a   : > { %v500_v20 = vpop.permute.xlu1 %499  ;;  %v182_v21 = vpop.permute.xlu0 %181  ;;  %1836 = vmatprep.subr.mxu1 %v1897_v0 }
  0x8b   : > { %v187_v22 = vsel %vm185_vm3, %v182_v21, %v184_v14  ;;  %v186_v23 = vsel %vm185_vm3, %v180_v15, %v182_v21  ;;  %v505_v27 = vsel %vm503_vm4, %v500_v20, %v502_v17  ;;  %v504_v28 = vsel %vm503_vm4, %v498_v18, %v500_v20 }
  0x8c   : > { %1749 = vmatprep.subr.msk.mxu0 %vm192_vm1, %v187_v22  ;;  %1834 = vmatmul.mubr.msk.f32.vlgmr.msra.gmra.mxu1 %vm188_vm2, %v1759_v19 }
  0x8d   : > { %1750 = vmatpush1.msk.msra.mxu0 %vm192_vm1, %v186_v23  ;;  %1838 = vmatprep.mubr.msk.f32.mxu1 %vm1898_vm0, %v1897_v0 }
  0x8e   : > { %v671_v24 = vpop.permute.xlu1 %670  ;;  %1751 = vmatmul.mubr.msk.f32.vlgmr.msra.gmra.mxu0 %vm188_vm2, %v1748_v13  ;;  %1754 = vmatprep.subr.msk.mxu0 %vm192_vm1, %v1956_v4  ;;  %v669_v25 = vpop.permute.xlu0 %668 }
  0x8f   : > { %1755 = vmatpush1.msk.msra.mxu0 %vm192_vm1, %v1950_v2  ;;  %1837 = vmatpush3.msk.msra.mxu1 %vm192_vm1, %v671_v24  ;;  %v674_v31 = vsel %vm672_vm5, %v669_v25, %v671_v24 }
  0x90   : > { %1760 = vmatprep.subr.msk.mxu0 %vm192_vm1, %v505_v27  ;;  %413 = vmatprep.mubr.f32.mxu0 %v1897_v0 }
  0x91   : > { %1841 = vmatprep.subr.mxu1 %v1897_v0  ;;  %1839 = vmatmul.mubr.msk.f32.vlgmr.msra.gmra.mxu1 %vm188_vm2, %v1765_v26 }
  0x92   : > { %v838_v29 = vpop.permute.xlu1 %837  ;;  %1756 = vmatmul.mubr.msk.f32.vlgmr.msra.gmra.mxu0 %vm188_vm2, %v173_v16  ;;  %v667_v30 = vpop.permute.xlu0 %666  ;;  %1843 = vmatprep.mubr.msk.f32.mxu1 %vm1898_vm0, %v1897_v0 }
  0x93   : > { %1761 = vmatpush1.msk.msra.mxu0 %vm192_vm1, %v504_v28  ;;  %579 = vmatprep.mubr.f32.mxu0 %v1897_v0  ;;  %v673_v32 = vsel %vm672_vm5, %v667_v30, %v669_v25 }
  0x94   : > { %1766 = vmatprep.subr.msk.mxu0 %vm192_vm1, %v674_v31 }
  0x96   : > { %v836_v33 = vpop.permute.xlu1 %835  ;;  %1762 = vmatmul.mubr.msk.f32.vlgmr.msra.gmra.mxu0 %vm188_vm2, %v1759_v19  ;;  %v840_v34 = vpop.permute.xlu0 %839 }
  0x97   : > { %1767 = vmatpush1.msk.msra.mxu0 %vm192_vm1, %v673_v32  ;;  %v843_v36 = vsel %vm841_vm6, %v838_v29, %v840_v34  ;;  %1842 = vmatpush3.msk.msra.mxu1 %vm192_vm1, %v840_v34  ;;  %v842_v37 = vsel %vm841_vm6, %v836_v33, %v838_v29 }
  0x98   : > { %1772 = vmatprep.subr.msk.mxu0 %vm192_vm1, %v843_v36  ;;  %748 = vmatprep.mubr.f32.mxu0 %v1897_v0 }
  0x99   : > { %1844 = vmatmul.mubr.msk.f32.vlgmr.msra.gmra.mxu1 %vm188_vm2, %v1771_v35  ;;  %1846 = vmatprep.subr.mxu1 %v1897_v0 }
  0x9a   : > { %v1009_v38 = vpop.permute.xlu1 %1008  ;;  %1768 = vmatmul.mubr.msk.f32.vlgmr.msra.gmra.mxu0 %vm188_vm2, %v1765_v26  ;;  %v1007_v39 = vpop.permute.xlu0 %1006  ;;  %1848 = vmatprep.mubr.msk.f32.mxu1 %vm1898_vm0, %v1897_v0 }
  0x9b   : > { %1773 = vmatpush1.msk.msra.mxu0 %vm192_vm1, %v842_v37  ;;  %v1012_v41 = vsel %vm1010_vm7, %v1007_v39, %v1009_v38  ;;  %1847 = vmatpush3.msk.msra.mxu1 %vm192_vm1, %v1009_v38 }
  0x9c   : > { %1778 = vmatprep.subr.msk.mxu0 %vm192_vm1, %v1012_v41  ;;  %917 = vmatprep.mubr.f32.mxu0 %v1897_v0 }
  0x9d   : > { %1849 = vmatmul.mubr.msk.f32.vlgmr.msra.gmra.mxu1 %vm188_vm2, %v1777_v40  ;;  %1851 = vmatprep.subr.mxu1 %v1897_v0 }
  0x9e   : > { %v1176_v42 = vpop.permute.xlu1 %1175  ;;  %1774 = vmatmul.mubr.msk.f32.vlgmr.msra.gmra.mxu0 %vm188_vm2, %v1771_v35  ;;  %v1005_v43 = vpop.permute.xlu0 %1004  ;;  %1853 = vmatprep.mubr.msk.f32.mxu1 %vm1898_vm0, %v1897_v0 }
  0x9f   : > { %v1011_v44 = vsel %vm1010_vm7, %v1005_v43, %v1007_v39  ;;  %1086 = vmatprep.mubr.f32.mxu0 %v1897_v0 }
  0xa0   : > { %1779 = vmatpush1.msk.msra.mxu0 %vm192_vm1, %v1011_v44 }
  0xa2   : > { %v1174_v46 = vpop.permute.xlu1 %1173  ;;  %1780 = vmatmul.mubr.msk.f32.vlgmr.msra.gmra.mxu0 %vm188_vm2, %v1777_v40  ;;  %v1178_v47 = vpop.permute.xlu0 %1177 }
  0xa3   : > { %v1180_v48 = vsel %vm1179_vm8, %v1174_v46, %v1176_v42  ;;  %v1181_v49 = vsel %vm1179_vm8, %v1176_v42, %v1178_v47  ;;  %1852 = vmatpush3.msk.msra.mxu1 %vm192_vm1, %v1178_v47  ;;  %1255 = vmatprep.mubr.f32.mxu0 %v1897_v0 }
  0xa4   : > { %1784 = vmatprep.subr.msk.mxu0 %vm192_vm1, %v1181_v49  ;;  %1854 = vmatmul.mubr.msk.f32.vlgmr.msra.gmra.mxu1 %vm188_vm2, %v1783_v45 }
  0xa5   : > { %1785 = vmatpush1.msk.msra.mxu0 %vm192_vm1, %v1180_v48  ;;  %1856 = vmatprep.subr.mxu1 %v1897_v0 }
  0xa6   : > { %v1347_v51 = vpop.permute.xlu1 %1346  ;;  %1786 = vmatmul.mubr.msk.f32.vlgmr.msra.gmra.mxu0 %vm188_vm2, %v1783_v45  ;;  %v1345_v52 = vpop.permute.xlu0 %1344  ;;  %1858 = vmatprep.mubr.msk.f32.mxu1 %vm1898_vm0, %v1897_v0 }
  0xa7   : > { %v1350_v53 = vsel %vm1348_vm9, %v1345_v52, %v1347_v51  ;;  %1857 = vmatpush3.msk.msra.mxu1 %vm192_vm1, %v1347_v51  ;;  %1424 = vmatprep.mubr.f32.mxu0 %v1897_v0 }
  0xa8   : > { %1790 = vmatprep.subr.msk.mxu0 %vm192_vm1, %v1350_v53  ;;  %1859 = vmatmul.mubr.msk.f32.vlgmr.msra.gmra.mxu1 %vm188_vm2, %v1789_v50 }
  0xa9   : > { %1861 = vmatprep.subr.mxu1 %v1897_v0  ;;  %1863 = vmatprep.mubr.msk.f32.mxu1 %vm1898_vm0, %v1897_v0 }
  0xaa   : > { %v1514_v54 = vpop.permute.xlu1 %1513  ;;  %v1343_v55 = vpop.permute.xlu0 %1342 }
  0xab   : > { %v1349_v56 = vsel %vm1348_vm9, %v1343_v55, %v1345_v52 }
  0xac   : > { %1791 = vmatpush1.msk.msra.mxu0 %vm192_vm1, %v1349_v56 }
  0xad   : > { %1792 = vmatmul.mubr.msk.f32.vlgmr.msra.gmra.mxu0 %vm188_vm2, %v1789_v50 }
  0xae   : > { %v1512_v58 = vpop.permute.xlu1 %1511  ;;  %v1516_v59 = vpop.permute.xlu0 %1515  ;;  %1593 = vmatprep.mubr.f32.mxu0 %v1897_v0 }
  0xaf   : > { %v1518_v60 = vsel %vm1517_vm10, %v1512_v58, %v1514_v54  ;;  %v1519_v61 = vsel %vm1517_vm10, %v1514_v54, %v1516_v59  ;;  %1862 = vmatpush3.msk.msra.mxu1 %vm192_vm1, %v1516_v59 }
  0xb0   : > { %1796 = vmatprep.subr.msk.mxu0 %vm192_vm1, %v1519_v61  ;;  %1864 = vmatmul.mubr.msk.f32.vlgmr.msra.gmra.mxu1 %vm188_vm2, %v1795_v57 }
  0xb1   : > { %1797 = vmatpush1.msk.msra.mxu0 %vm192_vm1, %v1518_v60 }
  0xb2   : > { %1798 = vmatmul.mubr.msk.f32.vlgmr.msra.gmra.mxu0 %vm188_vm2, %v1795_v57 }
  0xbb   : > { %v1677_v49 = vpop.permute.xlu0 %1676 }
 0x144   : > { %v336_v62 = vpop.f32.mrf.mxu1 }
 0x146   : > { %v1825_v63 = vpop.f32.mrf.mxu1 }
 0x148   : > { %v486_v1 = vpop.f32.mrf.mxu1 }
 0x149   : > { %v487_v14 = vadd.f32 %v486_v1, %v336_v62 }
 0x14a   : > { %v1830_v2 = vpop.f32.mrf.mxu1 }
 0x14c   : > { %v652_v3 = vpop.f32.mrf.mxu1 }
 0x14d   : > { %v658_v19 = vadd.f32 %v652_v3, %v487_v14 }
 0x14e   : > { %v265_v4 = vpop.f32.mrf.mxu0  ;;  %v1835_v5 = vpop.f32.mrf.mxu1 }
 0x150   : > { %v267_v0 = vpop.f32.mrf.mxu0 }
 0x151   : > { %v821_v6 = vpop.f32.mrf.mxu1 }
 0x152   : > { %v415_v7 = vpop.f32.mrf.mxu0  ;;  %v827_v23 = vadd.f32 %v821_v6, %v658_v19 }
 0x153   : > { %v1840_v8 = vpop.f32.mrf.mxu1  ;;  %v416_v26 = vadd.f32 %v415_v7, %v265_v4 }
 0x154   : > { %v417_v9 = vpop.f32.mrf.mxu0 }
 0x155   : > { %v418_v28 = vadd.f32 %v417_v9, %v267_v0 }
 0x156   : > { %v581_v10 = vpop.f32.mrf.mxu0 }
 0x157   : > { %v656_v29 = vadd.f32 %v581_v10, %v416_v26 }
 0x158   : > { %v583_v11 = vpop.f32.mrf.mxu0 }
 0x159   : > { %v990_v12 = vpop.f32.mrf.mxu1  ;;  %v657_v33 = vadd.f32 %v583_v11, %v418_v28 }
 0x15a   : > { %v750_v13 = vpop.f32.mrf.mxu0  ;;  %v996_v30 = vadd.f32 %v990_v12, %v827_v23 }
 0x15b   : > { %v1845_v15 = vpop.f32.mrf.mxu1  ;;  %v825_v34 = vadd.f32 %v750_v13, %v656_v29 }
 0x15c   : > { %v752_v16 = vpop.f32.mrf.mxu0 }
 0x15d   : > { %v1159_v17 = vpop.f32.mrf.mxu1  ;;  %v826_v36 = vadd.f32 %v752_v16, %v657_v33 }
 0x15e   : > { %v919_v18 = vpop.f32.mrf.mxu0  ;;  %v1165_v38 = vadd.f32 %v1159_v17, %v996_v30 }
 0x15f   : > { %v1850_v20 = vpop.f32.mrf.mxu1  ;;  %v994_v37 = vadd.f32 %v919_v18, %v825_v34 }
 0x160   : > { %v921_v21 = vpop.f32.mrf.mxu0 }
 0x161   : > { %v995_v40 = vadd.f32 %v921_v21, %v826_v36 }
 0x162   : > { %v1088_v22 = vpop.f32.mrf.mxu0 }
 0x163   : > { %v1163_v41 = vadd.f32 %v1088_v22, %v994_v37 }
 0x164   : > { %v1090_v24 = vpop.f32.mrf.mxu0  ;;  %v1328_v25 = vpop.f32.mrf.mxu1 }
 0x165   : > { %v1334_v42 = vadd.f32 %v1328_v25, %v1165_v38  ;;  %v1164_v44 = vadd.f32 %v1090_v24, %v995_v40 }
 0x166   : > { %v1855_v27 = vpop.f32.mrf.mxu1  ;;  %v1257_v31 = vpop.f32.mrf.mxu0 }
 0x167   : > { %v1332_v45 = vadd.f32 %v1257_v31, %v1163_v41 }
 0x168   : > { %v1497_v32 = vpop.f32.mrf.mxu1  ;;  %v1259_v39 = vpop.f32.mrf.mxu0 }
 0x169   : > { %v1503_v46 = vadd.f32 %v1497_v32, %v1334_v42  ;;  %v1333_v50 = vadd.f32 %v1259_v39, %v1164_v44 }
 0x16a   : > { %v1860_v35 = vpop.f32.mrf.mxu1 }
 0x16d   : > { %v1426_v43 = vpop.f32.mrf.mxu0 }
 0x16e   : > { %v1501_v51 = vadd.f32 %v1426_v43, %v1332_v45 }
 0x16f   : > { %v1428_v47 = vpop.f32.mrf.mxu0 }
 0x170   : > { %v1666_v48 = vpop.f32.mrf.mxu1  ;;  %v1502_v55 = vadd.f32 %v1428_v47, %v1333_v50 }
 0x171   : > { %v1672_v52 = vadd.f32 %v1666_v48, %v1503_v46 }
 0x172   : > { %v1595_v53 = vpop.f32.mrf.mxu0  ;;  %v1865_v54 = vpop.f32.mrf.mxu1 }
 0x173   : > { %v1670_v56 = vadd.f32 %v1595_v53, %v1501_v51  ;;  %v1681_v57 = vadd.f32 %v1677_v49, %v1672_v52 }
 0x174   : > { %v1597_v58 = vpop.f32.mrf.mxu0 }
 0x175   : > { %v1679_v59 = vadd.f32 %v1677_v49, %v1670_v56  ;;  %1685 = vst.msk [vmem:[%s170_s24 + $0x10] sm:$0xff] %vm1684_vm11, %v1681_v57  ;;  %v1671_v60 = vadd.f32 %v1597_v58, %v1502_v55 }
 0x177   : > { %1682 = vst [vmem:[%s170_s24] sm:$0xff] %v1679_v59  ;;  %v1680_v61 = vadd.f32 %v1677_v49, %v1671_v60 }
 0x179   : > { %1683 = vst [vmem:[%s170_s24 + $0x8] sm:$0xff] %v1680_v61 }
 0x17a PF: > { %s13_s12 = sadd.s32 1, %s1895_s12  }
 0x17b   : > { %p10_p4 = scmp.ge.s32.totalorder %s13_s12, 4  }
 0x17d   :  { %12 = sbr.rel (!%p10_p4) target bundleno = 1 (0x1), region = 70 }

</bundles_post_ra>
